<compile_context>
chip_gen: v7x
topology: tpu7x:2x2x1
jax: 0.10.0
libtpu: 0.0.40
codegen_flags: <defaults>
</compile_context>

<pallas_src>
import jax
import jax.numpy as jnp
from jax import lax
from jax.experimental import pallas as pl
from jax.experimental.pallas import tpu as pltpu


def _round_up(v, m):
    return (v + m - 1) // m * m


def _vmem_capacity_bytes():
    try:
        return int(pltpu.get_tpu_info().vmem_capacity_bytes)
    except Exception:
        return 128 * 1024 * 1024  # conservative v5e/v6e figure (v7x reports 64 MiB)


def _pick_edge_tile(e, n, vmem_cap):
    """Largest multiple-of-8 divisor of E (<=1024) whose in-VMEM one-hot
    footprint (2*TE*N*4 B) stays within ~1/16 of VMEM; otherwise one tile."""
    budget = max(vmem_cap // 16, 1 << 20)
    cap = max(8, budget // max(1, 8 * n))
    limit = min(cap, 1024, e)
    start = (limit // 8) * 8
    for cand in range(start, 0, -8):
        if e % cand == 0:
            return cand
    return e


def _vmem_limit_bytes(n, f_in, fg, f_out_pad, te, vmem_cap):
    """Shape-derived VMEM budget (scratch + double-buffered blocks + temporaries)."""
    f32 = 4
    n8 = _round_up(max(n, 8), 8)
    te8 = _round_up(te, 8)
    scratch = 2 * n8 * fg * f32                                   # transformed + acc
    blocks = 2 * f32 * (n8 * _round_up(f_in, 128)                 # x
                        + _round_up(f_in, 8) * fg                 # projection block
                        + 8 * fg                                  # head map
                        + fg * f_out_pad                          # merge block
                        + n8 * f_out_pad                          # output block
                        + 2 * te8 * 128)                          # index tile (lane pad)
    temps = f32 * (2 * te8 * _round_up(n, 128)                    # in-VMEM one-hot
                   + 2 * te8 * fg                                 # gathered
                   + 3 * te8 * fg                                 # prod / attn / weighted
                   + n8 * fg)                                     # contrib
    total = scratch + blocks + temps
    return int(min(max(2 * total, 32 * 1024 * 1024), int(vmem_cap * 0.9)))


def _make_kernel(edge_tile, num_nodes):
    te = edge_tile
    n = num_nodes

    def kernel(x_ref, w_ref, mt_ref, wm_ref, idx_ref, o_ref,
               tr_ref, acc_ref, m_ref, l_ref):
        k = pl.program_id(1)

        @pl.when(k == 0)
        def _init():
            # Fused projection for this head group, resident across all edge tiles.
            tr_ref[...] = jnp.dot(x_ref[...], w_ref[...],
                                  preferred_element_type=jnp.float32)       # [N, Fg]
            acc_ref[...] = jnp.zeros_like(acc_ref)
            m_ref[...] = jnp.full(m_ref.shape, -jnp.inf, dtype=jnp.float32)
            l_ref[...] = jnp.zeros_like(l_ref)

        transformed = tr_ref[...]                                           # [N, Fg]
        mt = mt_ref[...]                                                    # [Hg, Fg]

        # Stacked [src | dst] one-hot built IN VMEM from the tiny index tile
        # (no O(E*N) HBM stream; f32 0/1 keeps gather/scatter bit-exact).
        idx = idx_ref[...]                                                  # [2*TE, 1] i32
        onehot = (idx == lax.broadcasted_iota(jnp.int32, (2 * te, n), 1)
                  ).astype(jnp.float32)                                     # [2*TE, N]

        # One stacked gather matmul for src and tgt rows of all heads in the group.
        gathered = jnp.dot(onehot, transformed,
                           preferred_element_type=jnp.float32)              # [2*TE, Fg]
        src = gathered[:te]                                                 # [TE, Fg]
        tgt = gathered[te:]                                                 # [TE, Fg]
        scatter_oh = onehot[:te]                                            # [TE, N]

        # Per-head dot-product scores with edges on the lane axis: [Hg, TE].
        prod = src * tgt
        scores = lax.dot_general(mt, prod, (((1,), (1,)), ((), ())),
                                 preferred_element_type=jnp.float32)

        # Online softmax over ALL edges (dim=0 in the reference), per head.
        m_prev = m_ref[...]
        m_new = jnp.maximum(m_prev, jnp.max(scores, axis=-1, keepdims=True))
        alpha = jnp.exp(m_prev - m_new)                                     # [Hg, 1]
        p = jnp.exp(scores - m_new)                                         # [Hg, TE]
        m_ref[...] = m_new
        l_ref[...] = alpha * l_ref[...] + jnp.sum(p, axis=-1, keepdims=True)

        # Broadcast per-head weights / rescales to the fused column layout.
        attn_cols = lax.dot_general(p, mt, (((0,), (0,)), ((), ())),
                                    preferred_element_type=jnp.float32)     # [TE, Fg]
        weighted = attn_cols * tgt

        # Scatter-add into source-node rows: contract the edge axis directly.
        contrib = lax.dot_general(scatter_oh, weighted, (((0,), (0,)), ((), ())),
                                  preferred_element_type=jnp.float32)       # [N, Fg]
        alpha_cols = lax.dot_general(alpha, mt, (((0,), (0,)), ((), ())),
                                     preferred_element_type=jnp.float32)    # [1, Fg]
        acc_ref[...] = alpha_cols * acc_ref[...] + contrib
        # (A pl.when-gated "+= contrib" fast path when all alpha == 1 was considered but
        #  needs a vector->scalar reduction; the rescale is small vs. the gather/scatter
        #  matmuls, so it is intentionally left out to keep lowering simple.)

        @pl.when(k == pl.num_programs(1) - 1)
        def _finalize():
            inv_l = pl.reciprocal(l_ref[...], approx=False)                 # exact
            inv_cols = lax.dot_general(inv_l, mt, (((0,), (0,)), ((), ())),
                                       preferred_element_type=jnp.float32)  # [1, Fg]
            head_out = acc_ref[...] * inv_cols                              # [N, Fg]
            o_ref[...] = jnp.dot(head_out, wm_ref[...],
                                 preferred_element_type=jnp.float32
                                 ).astype(o_ref.dtype)                      # [N, Fpad]

    return kernel


def multihead_attention(node_features, edge_index, w_heads, w_merge, b_merge,
                        *, edge_tile=None, num_head_groups=1):
    """Pallas TPU forward of the graph MultiHeadAttention module.

    node_features: [N, F_in] f32, edge_index: [2, E] int,
    w_heads: [H, F_in, Dh] (torch linears[i].weight.T stacked),
    w_merge: [F_out, F_out] (torch Linear layout), b_merge: [F_out].
    num_head_groups: leading "parallel" grid axis over head groups (lets v7x's second
    TensorCore take half the heads); 1 == single group.
    """
    n, f_in = node_features.shape
    h, _, dh = w_heads.shape
    f_out = h * dh
    e = edge_index.shape[1]

    g = num_head_groups
    assert h % g == 0, "num_head_groups must divide num_heads"
    hg = h // g
    fg_real = hg * dh
    fg = _round_up(fg_real, 128)         # lane-dense per-group fused width
    f_out_pad = _round_up(f_out, 128)    # lane-dense merge output width

    vmem_cap = _vmem_capacity_bytes()
    if edge_tile is None:
        edge_tile = _pick_edge_tile(e, n, vmem_cap)
    assert e % edge_tile == 0, "pad the edge list to a multiple of edge_tile"
    assert edge_tile == e or edge_tile % 8 == 0
    num_tiles = e // edge_tile
    # TODO(synk): ragged/padded edge lists need score masking (-inf) before the softmax.

    # ---- wrapper-side layout plumbing (done once, cheap in XLA) -------------------
    # Fused per-head projection, grouped along columns and lane-padded: [F_in, G*Fg].
    w_cols = jnp.transpose(w_heads, (1, 0, 2)).reshape(f_in, f_out)
    w_all = jnp.concatenate(
        [jnp.pad(w_cols[:, i * fg_real:(i + 1) * fg_real],
                 ((0, 0), (0, fg - fg_real))) for i in range(g)], axis=1)

    # Local head -> fused-column indicator [Hg, Fg] (identical for every group).
    mt = (jnp.arange(hg)[:, None] == (jnp.arange(fg)[None, :] // dh)
          ).astype(jnp.float32)

    # Merge weights W^T, grouped along rows and lane-padded: [G*Fg, F_out_pad].
    wm_t = w_merge.T
    wm_all = jnp.concatenate(
        [jnp.pad(wm_t[i * fg_real:(i + 1) * fg_real, :],
                 ((0, fg - fg_real), (0, f_out_pad - f_out))) for i in range(g)],
        axis=0)

    # Per-tile stacked [src | dst] index columns: [num_tiles * 2*TE, 1] int32.
    src_idx = edge_index[0].astype(jnp.int32).reshape(num_tiles, edge_tile)
    dst_idx = edge_index[1].astype(jnp.int32).reshape(num_tiles, edge_tile)
    idx_cat = jnp.concatenate([src_idx, dst_idx], axis=1
                              ).reshape(num_tiles * 2 * edge_tile, 1)

    kernel = _make_kernel(edge_tile, n)

    grid_spec = pltpu.PrefetchScalarGridSpec(
        num_scalar_prefetch=0,
        grid=(g, num_tiles),
        in_specs=[
            pl.BlockSpec((n, f_in), lambda gi, k: (0, 0)),            # x (resident)
            pl.BlockSpec((f_in, fg), lambda gi, k: (0, gi)),          # group projection
            pl.BlockSpec((hg, fg), lambda gi, k: (0, 0)),             # head -> column map
            pl.BlockSpec((fg, f_out_pad), lambda gi, k: (gi, 0)),     # group merge rows
            pl.BlockSpec((2 * edge_tile, 1), lambda gi, k: (k, 0)),   # edge-index tile
        ],
        out_specs=pl.BlockSpec((n, f_out_pad), lambda gi, k: (0, gi)),  # per-group partial
        scratch_shapes=[
            pltpu.VMEM((n, fg), jnp.float32),   # transformed (resident per group)
            pltpu.VMEM((n, fg), jnp.float32),   # scatter-add accumulator
            pltpu.VMEM((hg, 1), jnp.float32),   # running max
            pltpu.VMEM((hg, 1), jnp.float32),   # running sum
        ],
    )

    partial = pl.pallas_call(
        kernel,
        out_shape=jax.ShapeDtypeStruct((n, g * f_out_pad), jnp.float32),
        grid_spec=grid_spec,
        compiler_params=pltpu.CompilerParams(
            # Head groups are independent ("parallel": megacore/v7x shards them);
            # the edge-tile axis carries the global softmax + scatter reduction.
            dimension_semantics=("parallel", "arbitrary"),
            vmem_limit_bytes=_vmem_limit_bytes(n, f_in, fg, f_out_pad,
                                               edge_tile, vmem_cap),
        ),
    )(node_features, w_all, mt, wm_all, idx_cat)

    # Sum the per-group partial merges, drop lane padding, add the merge bias.
    return partial.reshape(n, g, f_out_pad).sum(axis=1)[:, :f_out] + b_merge


def reference(node_features, edge_index, w_heads, w_merge, b_merge):
    """Pure-JAX mirror of the PyTorch forward pass for verification."""
    num_heads = w_heads.shape[0]
    heads = []
    for i in range(num_heads):
        transformed = node_features @ w_heads[i]
        src = transformed[edge_index[0]]
        tgt = transformed[edge_index[1]]
        scores = jnp.sum(src * tgt, axis=-1)
        attn = jax.nn.softmax(scores, axis=0)
        out = jnp.zeros_like(transformed)
        out = out.at[edge_index[0]].add(attn[:, None] * tgt)
        heads.append(out)
    concat = jnp.concatenate(heads, axis=1)
    return concat @ w_merge.T + b_merge


if __name__ == "__main__":
    # Small, deterministic problem sizes.
    N, E = 16, 32              # nodes, edges
    in_features = 8
    out_features = 32
    num_heads = 4
    per_head = out_features // num_heads

    key = jax.random.PRNGKey(0)
    k_x, k_e, k_w, k_wm, k_bm = jax.random.split(key, 5)

    node_features = jax.random.normal(k_x, (N, in_features), dtype=jnp.float32)
    edge_index = jax.random.randint(k_e, (2, E), 0, N, dtype=jnp.int32)

    # w_heads[i] corresponds to linears[i].weight.T  -> [F_in, Dh]
    w_heads = 0.1 * jax.random.normal(k_w, (num_heads, in_features, per_head),
                                      dtype=jnp.float32)
    w_merge = 0.1 * jax.random.normal(k_wm, (out_features, out_features),
                                      dtype=jnp.float32)
    b_merge = 0.1 * jax.random.normal(k_bm, (out_features,), dtype=jnp.float32)

    ref = reference(node_features, edge_index, w_heads, w_merge, b_merge)

    # Config A: 2 head groups (parallel axis for v7x) x 2 edge tiles, exercising the
    # online-softmax / accumulator-rescale path and the per-group partial merge.
    out_a = multihead_attention(node_features, edge_index, w_heads, w_merge, b_merge,
                                edge_tile=16, num_head_groups=2)
    out_a = jax.block_until_ready(out_a)
    assert out_a.shape == (N, out_features)
    assert jnp.allclose(out_a, ref, atol=1e-3, rtol=1e-3), "groups=2 mismatch vs reference"

    # Config B: defaults (single group, auto edge tile / VMEM budget).
    out_b = multihead_attention(node_features, edge_index, w_heads, w_merge, b_merge)
    out_b = jax.block_until_ready(out_b)
    assert jnp.allclose(out_b, ref, atol=1e-3, rtol=1e-3), "default config mismatch vs reference"

    print("KERNEL_OK")
</pallas_src>

<mosaic_0001>
module attributes {stable_mosaic.version = 11 : i64} {
  func.func @kernel(%arg0: i32, %arg1: i32, %arg2: memref<16x8xf32, #tpu.memory_space<vmem>>, %arg3: memref<8x128xf32, #tpu.memory_space<vmem>>, %arg4: memref<2x128xf32, #tpu.memory_space<vmem>>, %arg5: memref<128x128xf32, #tpu.memory_space<vmem>>, %arg6: memref<32x1xi32, #tpu.memory_space<vmem>>, %arg7: memref<16x128xf32, #tpu.memory_space<vmem>>, %arg8: memref<16x128xf32, #tpu.memory_space<vmem>>, %arg9: memref<16x128xf32, #tpu.memory_space<vmem>>, %arg10: memref<2x1xf32, #tpu.memory_space<vmem>>, %arg11: memref<2x1xf32, #tpu.memory_space<vmem>>) attributes {dimension_semantics = [#tpu.dimension_semantics<parallel>, #tpu.dimension_semantics<arbitrary>], iteration_bounds = array<i64: 2, 2>, scalar_prefetch = 0 : i64, scratch_operands = 4 : i64, tpu.core_type = #tpu.core_type<tc>, window_params = [{pipeline_mode = #tpu.pipeline_mode<synchronous>, transform_indices = @transform_0, window_bounds = array<i64: 16, 8>}, {transform_indices = @transform_1, window_bounds = array<i64: 8, 128>}, {pipeline_mode = #tpu.pipeline_mode<synchronous>, transform_indices = @transform_2, window_bounds = array<i64: 2, 128>}, {transform_indices = @transform_3, window_bounds = array<i64: 128, 128>}, {transform_indices = @transform_4, window_bounds = array<i64: 32, 1>}, {transform_indices = @transform_5, window_bounds = array<i64: 16, 128>}]} {
    %c0_i32 = arith.constant 0 : i32
    %0 = arith.cmpi eq, %arg1, %c0_i32 : i32
    %1 = arith.extui %0 : i1 to i32
    %c0_i32_0 = arith.constant 0 : i32
    %2 = arith.cmpi ne, %1, %c0_i32_0 : i32
    scf.if %2 {
      %c0_25 = arith.constant 0 : index
      %c0_26 = arith.constant 0 : index
      %45 = vector.load %arg2[%c0_25, %c0_26] : memref<16x8xf32, #tpu.memory_space<vmem>>, vector<16x8xf32>
      %c0_27 = arith.constant 0 : index
      %c0_28 = arith.constant 0 : index
      %46 = vector.load %arg3[%c0_27, %c0_28] : memref<8x128xf32, #tpu.memory_space<vmem>>, vector<8x128xf32>
      %cst_29 = arith.constant dense<0.000000e+00> : vector<16x128xf32>
      %47 = tpu.matmul %45, %46, %cst_29 {dimension_numbers = #tpu.dot_dimension_numbers<[1], [0], [0], [1], [0, 0, 1, 1], [], []>} : vector<16x8xf32>, vector<8x128xf32>, vector<16x128xf32> -> vector<16x128xf32>
      %c0_30 = arith.constant 0 : index
      %c0_31 = arith.constant 0 : index
      %48 = vector.load %arg8[%c0_30, %c0_31] : memref<16x128xf32, #tpu.memory_space<vmem>>, vector<16x128xf32>
      tpu.vector_store %arg8[%c0_30, %c0_31], %47 {strides = array<i32>} : memref<16x128xf32, #tpu.memory_space<vmem>>, vector<16x128xf32>,
      %cst_32 = arith.constant 0.000000e+00 : f32
      %49 = vector.broadcast %cst_32 : f32 to vector<16x128xf32>
      %c0_33 = arith.constant 0 : index
      %c0_34 = arith.constant 0 : index
      %50 = vector.load %arg9[%c0_33, %c0_34] : memref<16x128xf32, #tpu.memory_space<vmem>>, vector<16x128xf32>
      tpu.vector_store %arg9[%c0_33, %c0_34], %49 {strides = array<i32>} : memref<16x128xf32, #tpu.memory_space<vmem>>, vector<16x128xf32>,
      %cst_35 = arith.constant 0xFF800000 : f32
      %51 = vector.broadcast %cst_35 : f32 to vector<2x1xf32>
      %c0_36 = arith.constant 0 : index
      %c0_37 = arith.constant 0 : index
      %52 = vector.load %arg10[%c0_36, %c0_37] : memref<2x1xf32, #tpu.memory_space<vmem>>, vector<2x1xf32>
      tpu.vector_store %arg10[%c0_36, %c0_37], %51 {strides = array<i32>} : memref<2x1xf32, #tpu.memory_space<vmem>>, vector<2x1xf32>,
      %cst_38 = arith.constant 0.000000e+00 : f32
      %53 = vector.broadcast %cst_38 : f32 to vector<2x1xf32>
      %c0_39 = arith.constant 0 : index
      %c0_40 = arith.constant 0 : index
      %54 = vector.load %arg11[%c0_39, %c0_40] : memref<2x1xf32, #tpu.memory_space<vmem>>, vector<2x1xf32>
      tpu.vector_store %arg11[%c0_39, %c0_40], %53 {strides = array<i32>} : memref<2x1xf32, #tpu.memory_space<vmem>>, vector<2x1xf32>,
    } else {
    }
    %c0 = arith.constant 0 : index
    %c0_1 = arith.constant 0 : index
    %3 = vector.load %arg8[%c0, %c0_1] : memref<16x128xf32, #tpu.memory_space<vmem>>, vector<16x128xf32>
    %c0_2 = arith.constant 0 : index
    %c0_3 = arith.constant 0 : index
    %4 = vector.load %arg4[%c0_2, %c0_3] : memref<2x128xf32, #tpu.memory_space<vmem>>, vector<2x128xf32>
    %c0_4 = arith.constant 0 : index
    %c0_5 = arith.constant 0 : index
    %5 = vector.load %arg6[%c0_4, %c0_5] : memref<32x1xi32, #tpu.memory_space<vmem>>, vector<32x1xi32>
    %6 = tpu.iota {dimensions = array<i32: 1>} : vector<32x16xi32>
    %7 = vector.broadcast %5 : vector<32x1xi32> to vector<32x16xi32>
    %8 = arith.cmpi eq, %7, %6 : vector<32x16xi32>
    %9 = arith.extui %8 : vector<32x16xi1> to vector<32x16xi32>
    %10 = arith.sitofp %9 : vector<32x16xi32> to vector<32x16xf32>
    %cst = arith.constant dense<0.000000e+00> : vector<32x128xf32>
    %11 = tpu.matmul %10, %3, %cst {dimension_numbers = #tpu.dot_dimension_numbers<[1], [0], [0], [1], [0, 0, 1, 1], [], []>} : vector<32x16xf32>, vector<16x128xf32>, vector<32x128xf32> -> vector<32x128xf32>
    %12 = vector.extract_strided_slice %11 {offsets = [0, 0], sizes = [16, 128], strides = [1, 1]} : vector<32x128xf32> to vector<16x128xf32>
    %13 = vector.extract_strided_slice %11 {offsets = [16, 0], sizes = [16, 128], strides = [1, 1]} : vector<32x128xf32> to vector<16x128xf32>
    %14 = vector.extract_strided_slice %10 {offsets = [0, 0], sizes = [16, 16], strides = [1, 1]} : vector<32x16xf32> to vector<16x16xf32>
    %15 = arith.mulf %12, %13 : vector<16x128xf32>
    %cst_6 = arith.constant dense<0.000000e+00> : vector<2x16xf32>
    %16 = tpu.matmul %4, %15, %cst_6 {dimension_numbers = #tpu.dot_dimension_numbers<[1], [1], [0], [0], [0, 0, 1, 0], [], []>} : vector<2x128xf32>, vector<16x128xf32>, vector<2x16xf32> -> vector<2x16xf32>
    %c0_7 = arith.constant 0 : index
    %c0_8 = arith.constant 0 : index
    %17 = vector.load %arg10[%c0_7, %c0_8] : memref<2x1xf32, #tpu.memory_space<vmem>>, vector<2x1xf32>
    %cst_9 = arith.constant dense<0xFF800000> : vector<2xf32>
    %18 = vector.multi_reduction <maximumf>, %16, %cst_9 [1] : vector<2x16xf32> to vector<2xf32>
    %19 = vector.shape_cast %18 : vector<2xf32> to vector<2x1xf32>
    %20 = arith.maximumf %17, %19 : vector<2x1xf32>
    %21 = arith.subf %17, %20 : vector<2x1xf32>
    %22 = math.exp %21 : vector<2x1xf32>
    %23 = vector.broadcast %20 : vector<2x1xf32> to vector<2x16xf32>
    %24 = arith.subf %16, %23 : vector<2x16xf32>
    %25 = math.exp %24 : vector<2x16xf32>
    %c0_10 = arith.constant 0 : index
    %c0_11 = arith.constant 0 : index
    %26 = vector.load %arg10[%c0_10, %c0_11] : memref<2x1xf32, #tpu.memory_space<vmem>>, vector<2x1xf32>
    tpu.vector_store %arg10[%c0_10, %c0_11], %20 {strides = array<i32>} : memref<2x1xf32, #tpu.memory_space<vmem>>, vector<2x1xf32>,
    %c0_12 = arith.constant 0 : index
    %c0_13 = arith.constant 0 : index
    %27 = vector.load %arg11[%c0_12, %c0_13] : memref<2x1xf32, #tpu.memory_space<vmem>>, vector<2x1xf32>
    %28 = arith.mulf %22, %27 : vector<2x1xf32>
    %cst_14 = arith.constant dense<0.000000e+00> : vector<2xf32>
    %29 = vector.multi_reduction <add>, %25, %cst_14 [1] : vector<2x16xf32> to vector<2xf32>
    %30 = vector.shape_cast %29 : vector<2xf32> to vector<2x1xf32>
    %31 = arith.addf %28, %30 : vector<2x1xf32>
    %c0_15 = arith.constant 0 : index
    %c0_16 = arith.constant 0 : index
    %32 = vector.load %arg11[%c0_15, %c0_16] : memref<2x1xf32, #tpu.memory_space<vmem>>, vector<2x1xf32>
    tpu.vector_store %arg11[%c0_15, %c0_16], %31 {strides = array<i32>} : memref<2x1xf32, #tpu.memory_space<vmem>>, vector<2x1xf32>,
    %cst_17 = arith.constant dense<0.000000e+00> : vector<16x128xf32>
    %33 = tpu.matmul %25, %4, %cst_17 {dimension_numbers = #tpu.dot_dimension_numbers<[0], [0], [1], [1], [0, 1, 1, 1], [], []>} : vector<2x16xf32>, vector<2x128xf32>, vector<16x128xf32> -> vector<16x128xf32>
    %34 = arith.mulf %33, %13 : vector<16x128xf32>
    %cst_18 = arith.constant dense<0.000000e+00> : vector<16x128xf32>
    %35 = tpu.matmul %14, %34, %cst_18 {dimension_numbers = #tpu.dot_dimension_numbers<[0], [0], [1], [1], [0, 1, 1, 1], [], []>} : vector<16x16xf32>, vector<16x128xf32>, vector<16x128xf32> -> vector<16x128xf32>
    %cst_19 = arith.constant dense<0.000000e+00> : vector<1x128xf32>
    %36 = tpu.matmul %22, %4, %cst_19 {dimension_numbers = #tpu.dot_dimension_numbers<[0], [0], [1], [1], [0, 1, 1, 1], [], []>} : vector<2x1xf32>, vector<2x128xf32>, vector<1x128xf32> -> vector<1x128xf32>
    %c0_20 = arith.constant 0 : index
    %c0_21 = arith.constant 0 : index
    %37 = vector.load %arg9[%c0_20, %c0_21] : memref<16x128xf32, #tpu.memory_space<vmem>>, vector<16x128xf32>
    %38 = vector.broadcast %36 : vector<1x128xf32> to vector<16x128xf32>
    %39 = arith.mulf %38, %37 : vector<16x128xf32>
    %40 = arith.addf %39, %35 : vector<16x128xf32>
    %c0_22 = arith.constant 0 : index
    %c0_23 = arith.constant 0 : index
    %41 = vector.load %arg9[%c0_22, %c0_23] : memref<16x128xf32, #tpu.memory_space<vmem>>, vector<16x128xf32>
    tpu.vector_store %arg9[%c0_22, %c0_23], %40 {strides = array<i32>} : memref<16x128xf32, #tpu.memory_space<vmem>>, vector<16x128xf32>,
    %c1_i32 = arith.constant 1 : i32
    %42 = arith.cmpi eq, %arg1, %c1_i32 : i32
    %43 = arith.extui %42 : i1 to i32
    %c0_i32_24 = arith.constant 0 : i32
    %44 = arith.cmpi ne, %43, %c0_i32_24 : i32
    scf.if %44 {
      %c0_25 = arith.constant 0 : index
      %c0_26 = arith.constant 0 : index
      %45 = vector.load %arg11[%c0_25, %c0_26] : memref<2x1xf32, #tpu.memory_space<vmem>>, vector<2x1xf32>
      %46 = tpu.reciprocal %45 : vector<2x1xf32> -> vector<2x1xf32>
      %cst_27 = arith.constant dense<0.000000e+00> : vector<1x128xf32>
      %47 = tpu.matmul %46, %4, %cst_27 {dimension_numbers = #tpu.dot_dimension_numbers<[0], [0], [1], [1], [0, 1, 1, 1], [], []>} : vector<2x1xf32>, vector<2x128xf32>, vector<1x128xf32> -> vector<1x128xf32>
      %c0_28 = arith.constant 0 : index
      %c0_29 = arith.constant 0 : index
      %48 = vector.load %arg9[%c0_28, %c0_29] : memref<16x128xf32, #tpu.memory_space<vmem>>, vector<16x128xf32>
      %49 = vector.broadcast %47 : vector<1x128xf32> to vector<16x128xf32>
      %50 = arith.mulf %48, %49 : vector<16x128xf32>
      %c0_30 = arith.constant 0 : index
      %c0_31 = arith.constant 0 : index
      %51 = vector.load %arg5[%c0_30, %c0_31] : memref<128x128xf32, #tpu.memory_space<vmem>>, vector<128x128xf32>
      %cst_32 = arith.constant dense<0.000000e+00> : vector<16x128xf32>
      %52 = tpu.matmul %50, %51, %cst_32 {dimension_numbers = #tpu.dot_dimension_numbers<[1], [0], [0], [1], [0, 0, 1, 1], [], []>} : vector<16x128xf32>, vector<128x128xf32>, vector<16x128xf32> -> vector<16x128xf32>
      %c0_33 = arith.constant 0 : index
      %c0_34 = arith.constant 0 : index
      %53 = vector.load %arg7[%c0_33, %c0_34] : memref<16x128xf32, #tpu.memory_space<vmem>>, vector<16x128xf32>
      tpu.vector_store %arg7[%c0_33, %c0_34], %52 {strides = array<i32>} : memref<16x128xf32, #tpu.memory_space<vmem>>, vector<16x128xf32>,
    } else {
    }
    return
  }
  func.func @transform_0(%arg0: i32, %arg1: i32) -> (i32, i32) {
    %c0_i32 = arith.constant 0 : i32
    %c0_i32_0 = arith.constant 0 : i32
    %c0_i32_1 = arith.constant 0 : i32
    return %c0_i32, %c0_i32_0 : i32, i32
  }
  func.func @transform_1(%arg0: i32, %arg1: i32) -> (i32, i32) {
    %c0_i32 = arith.constant 0 : i32
    %c0_i32_0 = arith.constant 0 : i32
    return %c0_i32, %arg0 : i32, i32
  }
  func.func @transform_2(%arg0: i32, %arg1: i32) -> (i32, i32) {
    %c0_i32 = arith.constant 0 : i32
    %c0_i32_0 = arith.constant 0 : i32
    %c0_i32_1 = arith.constant 0 : i32
    return %c0_i32, %c0_i32_0 : i32, i32
  }
  func.func @transform_3(%arg0: i32, %arg1: i32) -> (i32, i32) {
    %c0_i32 = arith.constant 0 : i32
    %c0_i32_0 = arith.constant 0 : i32
    return %arg0, %c0_i32 : i32, i32
  }
  func.func @transform_4(%arg0: i32, %arg1: i32) -> (i32, i32) {
    %c0_i32 = arith.constant 0 : i32
    %c0_i32_0 = arith.constant 0 : i32
    return %arg1, %c0_i32 : i32, i32
  }
  func.func @transform_5(%arg0: i32, %arg1: i32) -> (i32, i32) {
    %c0_i32 = arith.constant 0 : i32
    %c0_i32_0 = arith.constant 0 : i32
    return %c0_i32, %arg0 : i32, i32
  }
}

</mosaic_0001>

<bundles_post_ra>
// kernel: tpu_custom_call.1
= control target key start
LH: loop header
LB: loop body
LE: loop exit
PB: predicated region body
PF: predicated region fallthrough
CT: control target
= control target key end

     0   :  { %s2065_s0 = inlined_call_operand.vmem [shape: f32[16,8], index: 0, kind: input, shape index: {}]   ;;  %s2066_s1 = inlined_call_operand.vmem [shape: f32[8,256], index: 1, kind: input, shape index: {}]   ;;  %s2067_s2 = inlined_call_operand.vmem [shape: f32[2,128], index: 2, kind: input, shape index: {}]   ;;  %s2068_s3 = inlined_call_operand.hbm [shape: f32[256,128], index: 3, kind: input, shape index: {}]   ;;  %s2069_s4 = inlined_call_operand.vmem [shape: s32[64,1], index: 4, kind: input, shape index: {}]   ;;  %s2070_s5 = inlined_call_operand.hbm [shape: f32[16,256], index: 5, kind: output, shape index: {}]  }
   0x1   :  { %2074 = sst [smem:[#allocation15_spill]] %s2068_s3 }
   0x2   :  { %10 = vsyncpa [#allocation7], 0 }
   0x3   :  { %12 = vsyncpa [#allocation7 + $0x1], 0 }
   0x4   :  { %13 = vsyncpa [#allocation8], 0 }
   0x5   :  { %15 = vsyncpa [#allocation8 + $0x1], 0  ;;  %s1779_s18 = smov 0   ;;  %s1781_s19 = smov 0  }
   0x6   :  { %s1783_s20 = smov 0   ;;  %s1785_s21 = smov 0  }
   0x7   :  { %s1787_s22 = smov 0   ;;  %s1789_s23 = smov 0  }
   0x8   :  { %s1791_s24 = smov 0   ;;  %s1793_s25 = smov 0  }
   0x9 LB: > { %2075 = sst [smem:[#allocation12_spill]] %s1728_s24  ;;  %s1303_s26 = sadd.s32 4294967295, %s1732_s25   ;;  %s1732_s25 = sphi %s1793_s25, %s21_s25   ;;  %s1728_s24 = sphi %s1791_s24, %s2089_s24   ;;  %s1724_s23 = sphi %s1789_s23, %s2094_s23   ;;  %s1720_s22 = sphi %s1787_s22, %s2087_s22   ;;  %s1716_s21 = sphi %s1785_s21, %s2093_s21   ;;  %s1712_s20 = sphi %s1783_s20, %s2092_s20   ;;  %s1708_s19 = sphi %s1781_s19, %s2091_s19   ;;  %s1704_s18 = sphi %s1779_s18, %s2090_s18  }
   0xa   : > { %s1304_s27 = sadd.s32 4294967294, %s1732_s25   ;;  %s30_s28 = sadd.s32 1, %s1724_s23 }
   0xb   : > { %s33_s29 = sadd.s32 1, %s1728_s24  ;;  %p31_p0 = scmp.ge.s32.totalorder %s30_s28, 2 }
   0xc   : > { %s108_s30 = sadd.s32 1, %s1712_s20  ;;  %p115_p1 = scmp.ne.s32.totalorder %s1712_s20, %s1708_s19 }
   0xd   : > { %p116_p2 = scmp.eq.s32.totalorder %s1732_s25, 0  ;;  %s2096_s28 = smov (%p31_p0, %s30_s28), 0 }
   0xe   : > { %2076 = sst [smem:[#allocation13_spill]] %s2096_s28  ;;  %s2098_s29 = smov (!%p31_p0, %s33_s29), %s1728_s24 }
   0xf   : > { %p1830_p3 = por %p116_p2, %p115_p1  ;;  %p121_p4 = scmp.ne.s32.totalorder %s1708_s19, %s1704_s18 }
  0x10   : > { %p35_p5 = scmp.ge.s32.totalorder %s2098_s29, 2  ;;  %p122_p6 = scmp.eq.s32.totalorder %s1303_s26, 0 }
  0x11   : > { %p171_p7 = scmp.eq.s32.totalorder %s1303_s26, 3  ;;  %p177_p8 = scmp.eq.s32.totalorder %s1304_s27, 3 }
  0x12   : > { %s2100_s29 = smov (%p35_p5, %s2098_s29), 0  ;;  %p1838_p9 = por %p122_p6, %p121_p4 }
  0x13   : > { %2078 = sst [smem:[#allocation14_spill]] %s2100_s29  ;;  %p1842_p10 = por %p171_p7, %p115_p1 }
  0x14   : > { %s105_s9 = ssub.s32 %s1728_s24, %s2100_s29  ;;  %p1848_p11 = por %p177_p8, %p121_p4 }
  0x15   : > { %s2080_s8 = scalar_select %p1842_p10, 1, 0 }
  0x16   : > { %s2081_s10 = scalar_select %p1848_p11, 1, 0 }
  0x17   : > { %p106_p12 = scmp.eq.s32.totalorder %s105_s9, 0  ;;  %p1517_p13 = scmp.lt.s32.totalorder %s1732_s25, 4 }
  0x18   : > { %s210_s11 = sand.u32 1, %s1712_s20   ;;  %s1341_s14 = sshll.u32 %s1728_s24, 11 }
  0x19   : > { %s1855_s12 = scalar_select %p106_p12, %s1712_s20, %s108_s30  }
  0x1a   : > { %s1307_s13 = sshll.u32 %s210_s11, 7  ;;  %s2082_s3 = sld [smem:[#allocation15_spill]] }
  0x1b   : > { %s214_s26 = scalar_lea.vmem [#allocation6], %s1307_s13  ;;  %p1867_p0 = pnand %p1517_p13, %p1830_p3 }
  0x1c   : > { %s221_s27 = sshll.u32 %s214_s26, 4  ;;  %s1872_s30 = scalar_lea.sflag [#allocation7], %s210_s11  ;;  %s1863_s27 = int_to_ptr.vmem [resolvable:$true] %s221_s27 }
  0x1d   : > { %p1606_p4 = pneg %p1867_p0 }
  0x20   : > { %s1861_s17 = scalar_lea.hbm %s2082_s3, %s1341_s14  ;;  %s1609_s6 = scalar_lea.hbm %s2082_s3, 4096 }
  0x21   : > { %s1604_s14 = scalar_lea.hbm %s1861_s17, 2048  ;;  %p1610_p3 = scmp.lt.u32.totalorder %s1861_s17, %s2082_s3 }
  0x22   : > { %p1605_p2 = scmp.ne.s32.totalorder %s1861_s17, %s1604_s14  ;;  %p1611_p7 = scmp.lt.u32.totalorder %s1609_s6, %s1604_s14 }
  0x23   : > { %p1613_p12 = scmp.lt.u32.totalorder %s1604_s14, %s1861_s17 }
  0x24   : > { %p1607_p5 = pnand %p1606_p4, %p1605_p2  ;;  %p1612_p8 = por %p1611_p7, %p1610_p3 }
  0x26   : > { %p1608_p6 = pneg %p1607_p5  ;;  %p1614_p13 = por %p1613_p12, %p1612_p8 }
  0x28   : > { %p1615_p1 = pnand %p1614_p13, %p1608_p6 }
  0x2a   : > { %1618 = shalt.err (!%p1615_p1)
}
  0x2b   : > { %s1619_s11 = scalar_lea.vmem %s1863_s27, 2048  ;;  %s1734_s13 = smov [#allocation6]  }
  0x2c   : > { %p1620_p2 = scmp.ne.s32.totalorder %s1863_s27, %s1619_s11  ;;  %s1624_s15 = sshll.u32 %s1734_s13, 4  ;;  %s1625_s15 = int_to_ptr.vmem [resolvable:$false] %s1624_s15 }
  0x2d   : > { %s1626_s16 = scalar_lea.vmem %s1625_s15, 4096  ;;  %p1627_p10 = scmp.lt.s32.totalorder %s1863_s27, %s1625_s15 }
  0x2e   : > { %p1622_p5 = pnand %p1620_p2, %p1606_p4  ;;  %p1628_p3 = scmp.lt.s32.totalorder %s1626_s16, %s1619_s11 }
  0x30   : > { %p1623_p11 = pneg %p1622_p5  ;;  %p1629_p7 = por %p1628_p3, %p1627_p10 }
  0x32   : > { %p1630_p8 = pnand %p1629_p7, %p1623_p11 }
  0x34   : > { %1633 = shalt.err (!%p1630_p8)
}
  0x35   : > { %s1735_s14 = smov 128   ;;  %s1736_s6 = smov 8  }
  0x36   : > { %1512 = dma.hbm_to_vmem [thread:$0]  (!%p1867_p0), %s1861_s17, 2048, %s1863_s27, %s1872_s30, %s1735_s14, %s1735_s14, %s1736_s6  }
  0x37   : > { %p238_p1 = scmp.lt.s32.totalorder %s1732_s25, 5  ;;  %p2084_p4 = scmp.ge.s32.totalorder %s1732_s25, 1 }
  0x39   : > { %p239_p6 = pnand %p2084_p4, %p238_p1 }
  0x3a   : > { %s1904_s26 = sand.u32 (!%p239_p6), 1, %s1708_s19  }
  0x3b   : > { %242 = sbr.rel (%p239_p6) target bundleno = 1975 (0x7b7), region = 40  ;;  %s1311_s11 = sshll.u32 (!%p239_p6), %s1904_s26, 7 }
  0x3c   : > { %s245_s13 = scalar_lea.sflag (!%p239_p6), [#allocation7], %s1904_s26  ;;  %s1908_s15 = scalar_lea.vmem (!%p239_p6), [#allocation6], %s1311_s11 }
  0x42   : > { %1695 = dma.done.wait (%p1838_p9), %s245_s13, 2048  }
  0x43   : > { %1697 = vsyncadd (%p1838_p9), %s245_s13, 4294965248  ;;  %s1312_s17 = sshll.u32 %s1904_s26, 4  ;;  %p284_p10 = scmp.lt.s32.totalorder %s1720_s22, 1 }
  0x44   : > { %s1314_s27 = sshll.u32 %s1716_s21, 2  ;;  %s1926_s13 = scalar_lea.vmem [#allocation9], %s1312_s17 }
  0x45   : > { %s285_s9 = scalar_select %p284_p10, %s1720_s22, 1 }
  0x46   : > { %p290_p11 = scmp.lt.s32.totalorder %s1314_s27, 7  ;;  %p1316_p9 = scmp.ne.s32.totalorder %s1716_s21, 0 }
  0x47   : > { %s1313_s30 = sshll.u32 %s285_s9, 3  ;;  %v299_v1 = vld [vmem:[%s2065_s0] sm:$0xff] (!%p1316_p9)  ;;  %vm302_vm0 = vcmask (!%p1316_p9), 64512   ;;  %v300_v2 = vld [vmem:[%s2065_s0 + $0x8] sm:$0xff] (!%p1316_p9)  ;;  %vm388_vm1 = vcmask (!%p1316_p9), 1024   ;;  %v1737_v3 = vmov (!%p1316_p9), 0.0  }
  0x48   : > { %s287_s6 = scalar_lea.vmem %s2066_s1, %s1313_s30  ;;  %s2102_s27 = smov (!%p290_p11, %s1314_s27), 7  ;;  %1385 = vmatprep.mubr.msk.f32.mxu0 (!%p1316_p9), %vm302_vm0, %v299_v1  ;;  %386 = vst [vmem:[#allocation3] sm:$0xff] (!%p1316_p9), %v1737_v3  ;;  %387 = vst [vmem:[#allocation3 + $0x8] sm:$0xff] (!%p1316_p9), %v1737_v3  ;;  %v1738_v4 = vmov (!%p1316_p9), -inf  }
  0x49   : > { %s1315_s11 = sshll.u32 %s2102_s27, 3  ;;  %298 = sbr.rel (%p1316_p9) target bundleno = 290 (0x122), region = 48  ;;  %v301_v0 = vld [vmem:[%s287_s6] sm:$0xff] (!%p1316_p9)  ;;  %389 = vst.msk [vmem:[#allocation4] sm:$0x3] (!%p1316_p9), %vm388_vm1, %v1738_v4 }
  0x4a   : > { %s1924_s7 = scalar_lea.vmem %s2069_s4, %s1315_s11  ;;  %1383 = vmatprep.subr.mxu0 (!%p1316_p9), %v301_v0  ;;  %390 = vst.msk [vmem:[#allocation5] sm:$0x3] (!%p1316_p9), %vm388_vm1, %v1737_v3 }
  0x4b   : > { %1384 = vmatpush3.msra.mxu0 (!%p1316_p9), %v301_v0 }
  0x4c   : > { %1386 = vmatmul.mubr.msk.f32.vlgmr.msra.gmra.mrb[0].mxu0 (!%p1316_p9), %vm302_vm0, %v300_v2 }
 0x11f   : > { %v1387_v5 = vpop.f32.mrb[0].mxu0 }
 0x120   : > { %385 = vst [vmem:[#allocation2 + $0x8] sm:$0xff] %v1387_v5  ;;  %v375_v6 = vpop.f32.mrb[1].mxu0 }
 0x121   : > { %384 = vst [vmem:[#allocation2] sm:$0xff] %v375_v6 }
 0x122 PF: > { %v396_v7 = vld [vmem:[%s1924_s7 + $0x10] sm:$0xff]  ;;  %v394_v8 = vld [vmem:[%s1924_s7] sm:$0xff]  ;;  %v1739_v9 = vmov 0   ;;  %v397_v13 = vld [vmem:[%s1924_s7 + $0x18] sm:$0xff]  ;;  %v398_v15 = vlaneseq  ;;  %vm424_vm2 = vcmask 130048   ;;  %v1740_v19 = vmov 0.0  }
 0x123   : > { %1597 = vset.pattern.permute.xlu1 %v1739_v9  ;;  %1596 = vset.pattern.permute.xlu0 %v1739_v9  ;;  %v395_v14 = vld [vmem:[%s1924_s7 + $0x8] sm:$0xff]  ;;  %v1741_v26 = vmov 0.0|0.0   ;;  %vm1742_vm7 = vmmov 0   ;;  %v1953_v34 = vld [vmem:[%s2067_s2] sm:$0x3]  ;;  %vm595_vm8 = vcmask 123904  }
 0x124   : > { %407 = vperm.xlu1 %1597, %v396_v7   ;;  %401 = vperm.xlu0 %1596, %v394_v8   ;;  %v399_v16 = vand.u32 127, %v398_v15  ;;  %v594_v38 = vld [vmem:[#allocation4] sm:$0x3]  ;;  %vm611_vm9 = vcmask 1024   ;;  %vm659_vm10 = vcmask 1041408   ;;  %vm652_vm11 = vcmask 15360  }
 0x125   : > { %1466 = vmatprep.subr.bf16.mxu1 %v1741_v26  ;;  %1402 = vmatprep.mubr.msk.f32.mxu1 %vm1742_vm7, %v1740_v19  ;;  %v613_v53 = vld [vmem:[#allocation5] sm:$0x3]  ;;  %v1975_v1 = vshrl.u32 %v398_v15, 7  ;;  %v959_v4 = vld [vmem:[#allocation3 + $0x8] sm:$0xff]  ;;  %v958_v5 = vld [vmem:[#allocation3] sm:$0xff]  ;;  %p1334_p0 = scmp.ne.s32.totalorder %s1716_s21, 1 }
 0x126   : > { %vm1744_vm12 = vmmov (!%p1334_p0), 0   ;;  %v1089_v15 = vld [vmem:[%s1908_s15] sm:$0xff] (!%p1334_p0) }
 0x127   : > { %v392_v11 = vld [vmem:[#allocation2 + $0x8] sm:$0xff]  ;;  %v962_v2 = vsub.s32 0, %v1975_v1 }
 0x128   : > { %v391_v10 = vld [vmem:[#allocation2] sm:$0xff]  ;;  %410 = vperm.xlu1 %1597, %v397_v13   ;;  %404 = vperm.xlu0 %1596, %v395_v14   ;;  %v1743_v13 = vmov (!%p1334_p0), 0.0  }
 0x129   : > { %v1462_v12 = vpack.c.bf16 %v392_v11, %v391_v10 }
 0x12b   : > { %1463 = vmatprep.subr.bf16.mxu0 %v1462_v12 }
 0x12c   : > { %1465 = vmatpush3.bf16.msra.mxu0 %v1462_v12 }
 0x12d   : > { %1405 = vmatprep.subr.msk.mxu0 %vm659_vm10, %v1953_v34 }
 0x1a3   : > { %v408_v17 = vpop.permute.xlu1 %407  ;;  %v402_v18 = vpop.permute.xlu0 %401 }
 0x1a4   : > { %vm412_vm3 = vcmp.eq.s32.totalorder %v402_v18, %v399_v16  ;;  %vm414_vm4 = vcmp.eq.s32.totalorder %v408_v17, %v399_v16  ;;  %v1091_v17 = vld [vmem:[%s1908_s15 + $0x10] sm:$0xff] (!%p1334_p0) }
 0x1a5   : > { %v1319_v20 = vsel %vm412_vm3, 1.0, %v1740_v19  ;;  %v1321_v23 = vsel %vm414_vm4, 1.0, %v1740_v19 }
 0x1a6   : > { %1392 = vmatprep.mubr.msk.f32.mxu0 %vm424_vm2, %v1319_v20 }
 0x1a7   : > { %v411_v21 = vpop.permute.xlu1 %410  ;;  %v405_v22 = vpop.permute.xlu0 %404 }
 0x1a8   : > { %vm413_vm5 = vcmp.eq.s32.totalorder %v405_v22, %v399_v16  ;;  %vm415_vm6 = vcmp.eq.s32.totalorder %v411_v21, %v399_v16  ;;  %v1090_v16 = vld [vmem:[%s1908_s15 + $0x8] sm:$0xff] (!%p1334_p0)  ;;  %v1093_v21 = vld [vmem:[%s1908_s15 + $0x20] sm:$0xff] (!%p1334_p0) }
 0x1a9   : > { %v1320_v24 = vsel %vm413_vm5, 1.0, %v1740_v19  ;;  %v1322_v25 = vsel %vm415_vm6, 1.0, %v1740_v19  ;;  %v1473_v18 = vpack.c.bf16 (!%p1334_p0), %v1090_v16, %v1089_v15  ;;  %v1094_v22 = vld [vmem:[%s1908_s15 + $0x28] sm:$0xff] (!%p1334_p0) }
 0x1aa   : > { %1393 = vmatmul.mubr.msk.f32.vlgmr.msra.gmra.mrb[0].mxu0 %vm424_vm2, %v1320_v24 }
 0x1ab   : > { %1395 = vmatprep.mubr.msk.f32.mxu0 %vm424_vm2, %v1321_v23  ;;  %1406 = vmatpush3.msk.msra.mxu0 %vm659_vm10, %v1953_v34  ;;  %v1481_v23 = vpack.c.bf16 (!%p1334_p0), %v1094_v22, %v1093_v21 }
 0x1ac   : > { %1417 = vmatprep.subr.mxu0 %v1740_v19 }
 0x1ae   : > { %1396 = vmatmul.mubr.msk.f32.gmra.mrb[2].mxu0 %vm424_vm2, %v1322_v25  ;;  %v1096_v25 = vld [vmem:[%s1908_s15 + $0x38] sm:$0xff] (!%p1334_p0) }
 0x27d   : > { %v1394_v27 = vpop.f32.mrb[0].mxu0 }
 0x27e   : > { %v503_v28 = vpop.f32.mrb[1].mxu0 }
 0x281   : > { %v1397_v29 = vpop.f32.mrb[2].mxu0 }
 0x282   : > { %v523_v30 = vmul.f32 %v1397_v29, %v1394_v27  ;;  %v513_v31 = vpop.f32.mrb[3].mxu0  ;;  %v1097_v27 = vld [vmem:[%s1908_s15 + $0x40] sm:$0xff] (!%p1334_p0) }
 0x283   : > { %v522_v32 = vmul.f32 %v513_v31, %v503_v28  ;;  %v1098_v28 = vld [vmem:[%s1908_s15 + $0x48] sm:$0xff] (!%p1334_p0) }
 0x285   : > { %v1467_v33 = vpack.c.bf16 %v523_v30, %v522_v32  ;;  %v1099_v30 = vld [vmem:[%s1908_s15 + $0x50] sm:$0xff] (!%p1334_p0) }
 0x287   : > { %1468 = vmatpush3.bf16.xpose.msra.mxu1 %v1467_v33  ;;  %v1101_v33 = vld [vmem:[%s1908_s15 + $0x60] sm:$0xff] (!%p1334_p0) }
 0x28e   : > { %1403 = vmatmul.mubr.f32.vlgmr.msra.gmra.mrb[0].mxu1 %v1953_v34 }
 0x361   : > { %v590_v35 = vpop.f32.mrb[0].mxu1 }
 0x362   : > { %v1404_v36 = vpop.f32.mrb[1].mxu1  ;;  %v596_v37 = vsel %vm595_vm8, %v590_v35, -inf }
 0x363   : > { %597 = vmax.xlane.f32.xlu0 %v596_v37  ;;  %v1103_v37 = vld [vmem:[%s1908_s15 + $0x70] sm:$0xff] (!%p1334_p0) }
 0x3f0   : > { %v598_v39 = vpop.xlane.xlu0 %597 }
 0x3f1   : > { %v599_v40 = vmax.f32 %v594_v38, %v598_v39 }
 0x3f3   : > { %v600_v41 = vsub.f32 %v594_v38, %v599_v40  ;;  %612 = vst.msk [vmem:[#allocation4] sm:$0x3] %vm611_vm9, %v599_v40  ;;  %605 = vperm.xlu1 %1597, %v599_v40   ;;  %v1104_v38 = vld [vmem:[%s1908_s15 + $0x78] sm:$0xff] (!%p1334_p0) }
 0x3f4   : > { %v1501_v39 = vpack.c.bf16 (!%p1334_p0), %v1104_v38, %v1103_v37 }
 0x3f5   : > { %v601_v42 = vmul.f32 1.442695, %v600_v41 }
 0x3f7   : > { %1598 = vpow2.f32 %v601_v42 }
 0x401   : > { %v1599_v43 = vpop.eup %1598 }
 0x402   : > { %853 = vxpose.xlu0.b32.start.end [1/1] (short) (narrow) %v1599_v43, 8  ;;  %v614_v54 = vmul.f32 %v1599_v43, %v613_v53 }
 0x472   : > { %v606_v44 = vpop.permute.xlu1 %605 }
 0x473   : > { %v608_v45 = vsub.f32 %v590_v35, %v606_v44 }
 0x475   : > { %v609_v46 = vmul.f32 1.442695, %v608_v45 }
 0x477   : > { %1600 = vpow2.f32 %v609_v46 }
 0x481   : > { %v1601_v47 = vpop.eup %1600 }
 0x482   : > { %620 = vxpose.xlu1.b32.start.end [1/1] (short) (narrow) %v1601_v47, 16  ;;  %v615_v48 = vsel %vm595_vm8, %v1601_v47, 0.0  ;;  %v869_v57 = vpop.trf.xlu0 }
 0x487   : > { %740 = vxpose.xlu1.b32.start [1/2] (short) (narrow) %v1319_v20, 16 }
 0x48b   : > { %741 = vxpose.xlu1.b32.end [2/2] (short) (narrow) %v1320_v24, 16  ;;  %v1095_v24 = vld [vmem:[%s1908_s15 + $0x30] sm:$0xff] (!%p1334_p0) }
 0x48c   : > { %v1485_v26 = vpack.c.bf16 (!%p1334_p0), %v1096_v25, %v1095_v24 }
 0x4b2   : > { %616 = vadd.xlane.f32.xlu1 %v615_v48 }
 0x502   : > { %v636_v49 = vpop.trf.xlu1 }
 0x503   : > { %1407 = vmatprep.mubr.msk.f32.mxu0 %vm652_vm11, %v636_v49 }
 0x506   : > { %v637_v50 = vpop.trf.xlu1 }
 0x507   : > { %1408 = vmatmul.mubr.msk.f32.vlgmr.msra.gmra.mrb[4].mxu0 %vm652_vm11, %v637_v50 }
 0x508   : > { %1418 = vmatpush3.msk.msra.mxu0 %vm659_vm10, %v1953_v34  ;;  %1419 = vmatprep.mubr.msk.f32.mxu0 %vm1742_vm7, %v1740_v19  ;;  %v1092_v19 = vld [vmem:[%s1908_s15 + $0x18] sm:$0xff] (!%p1334_p0) }
 0x509   : > { %1422 = vmatprep.subr.mxu0 (!%p1334_p0), %v1743_v13  ;;  %v1477_v20 = vpack.c.bf16 (!%p1334_p0), %v1092_v19, %v1091_v17 }
 0x50a   : > { %v756_v51 = vpop.trf.xlu1 }
 0x50b   : > { %1414 = vmatprep.mubr.msk.f32.mxu1 %vm424_vm2, %v756_v51  ;;  %1420 = vmatmul.mubr.msk.f32.vlgmr.msra.gmra.mrb[6].mxu0 %vm652_vm11, %v869_v57 }
 0x50c   : > { %1424 = vmatprep.mubr.msk.f32.mxu0 (!%p1334_p0), %vm1744_vm12, %v1743_v13  ;;  %1423 = vmatpush3.msk.msra.mxu0 (!%p1334_p0), %vm659_vm10, %v1953_v34  ;;  %v1102_v34 = vld [vmem:[%s1908_s15 + $0x68] sm:$0xff] (!%p1334_p0) }
 0x50d   : > { %v1497_v35 = vpack.c.bf16 (!%p1334_p0), %v1102_v34, %v1101_v33 }
 0x50e   : > { %v757_v52 = vpop.trf.xlu1 }
 0x53f   : > { %v617_v55 = vpop.xlane.xlu1 %616 }
 0x540   : > { %v618_v56 = vadd.f32 %v617_v55, %v614_v54 }
 0x542   : > { %619 = vst.msk [vmem:[#allocation5] sm:$0x3] %vm611_vm9, %v618_v56 }
 0x549   : > { %v974_v12 = vld [vmem:[#allocation5] sm:$0x3] (!%p1334_p0) }
 0x54a   : > { %1602 = vrcp.f32 (!%p1334_p0), %v974_v12 }
 0x554   : > { %v1603_v14 = vpop.eup (!%p1334_p0), %1602 }
 0x555   : > { %976 = vxpose.xlu0.b32.start.end [1/1] (short) (narrow) (!%p1334_p0), %v1603_v14, 8 }
 0x5d5   : > { %v992_v36 = vpop.trf.xlu0 (!%p1334_p0) }
 0x5d6   : > { %1425 = vmatmul.mubr.msk.f32.vlgmr.msra.gmra.mrb[0].mxu0 (!%p1334_p0), %vm652_vm11, %v992_v36 }
 0x5da   : > { %v1409_v58 = vpop.f32.mrb[4].mxu0 }
 0x5db   : > { %v739_v59 = vmul.f32 %v1409_v58, %v1397_v29  ;;  %v729_v60 = vpop.f32.mrb[5].mxu0  ;;  %v1489_v29 = vpack.c.bf16 (!%p1334_p0), %v1098_v28, %v1097_v27 }
 0x5dc   : > { %v738_v61 = vmul.f32 %v729_v60, %v513_v31  ;;  %v1100_v31 = vld [vmem:[%s1908_s15 + $0x58] sm:$0xff] (!%p1334_p0) }
 0x5dd   : > { %v1493_v32 = vpack.c.bf16 (!%p1334_p0), %v1100_v31, %v1099_v30 }
 0x5de   : > { %v1469_v62 = vpack.c.bf16 %v739_v59, %v738_v61  ;;  %v954_v63 = vpop.f32.mrb[6].mxu0 }
 0x5df   : > { %v1421_v0 = vpop.f32.mrb[7].mxu0  ;;  %v963_v3 = vrot.slane %v954_v63, %v962_v2 }
 0x5e0   : > { %1470 = vmatprep.subr.bf16.mxu1 %v1469_v62 }
 0x5e1   : > { %1472 = vmatpush3.bf16.msra.mxu1 %v1469_v62  ;;  %v965_v6 = vmul.f32 %v963_v3, %v959_v4  ;;  %v964_v7 = vmul.f32 %v963_v3, %v958_v5 }
 0x5e2   : > { %1474 = vmatprep.subr.bf16.mxu1 (!%p1334_p0), %v1473_v18 }
 0x5e4   : > { %1415 = vmatmul.mubr.msk.f32.vlgmr.msra.gmra.mrb[2].mxu1 %vm424_vm2, %v757_v52 }
 0x5e5   : > { %1476 = vmatpush3.bf16.msra.mxu1 (!%p1334_p0), %v1473_v18 }
 0x5e6   : > { %1478 = vmatprep.subr.bf16.mxu1 (!%p1334_p0), %v1477_v20 }
 0x5e9   : > { %1480 = vmatpush3.bf16.msra.mxu1 (!%p1334_p0), %v1477_v20 }
 0x5ea   : > { %1482 = vmatprep.subr.bf16.mxu1 (!%p1334_p0), %v1481_v23 }
 0x5ed   : > { %1484 = vmatpush3.bf16.msra.mxu1 (!%p1334_p0), %v1481_v23 }
 0x5ee   : > { %1486 = vmatprep.subr.bf16.mxu1 (!%p1334_p0), %v1485_v26 }
 0x5f1   : > { %1488 = vmatpush3.bf16.msra.mxu1 (!%p1334_p0), %v1485_v26 }
 0x5f2   : > { %1490 = vmatprep.subr.bf16.mxu1 (!%p1334_p0), %v1489_v29 }
 0x5f5   : > { %1492 = vmatpush3.bf16.msra.mxu1 (!%p1334_p0), %v1489_v29 }
 0x5f6   : > { %1494 = vmatprep.subr.bf16.mxu1 (!%p1334_p0), %v1493_v32 }
 0x5f9   : > { %1496 = vmatpush3.bf16.msra.mxu1 (!%p1334_p0), %v1493_v32 }
 0x5fa   : > { %1498 = vmatprep.subr.bf16.mxu1 (!%p1334_p0), %v1497_v35 }
 0x5fd   : > { %1500 = vmatpush3.bf16.msra.mxu1 (!%p1334_p0), %v1497_v35 }
 0x5fe   : > { %1502 = vmatprep.subr.bf16.mxu1 (!%p1334_p0), %v1501_v39 }
 0x601   : > { %1504 = vmatpush3.bf16.msra.mxu1 (!%p1334_p0), %v1501_v39 }
 0x6a9   : > { %v1077_v40 = vpop.f32.mrb[0].mxu0 (!%p1334_p0) }
 0x6aa   : > { %v1086_v43 = vrot.slane (!%p1334_p0), %v1077_v40, %v962_v2  ;;  %v1426_v44 = vpop.f32.mrb[1].mxu0 (!%p1334_p0) }
 0x6b5   : > { %973 = sbr.rel (%p1334_p0) target bundleno = 1948 (0x79c), region = 52 }
 0x6b7   : > { %v1416_v8 = vpop.f32.mrb[2].mxu1 }
 0x6b8   : > { %v967_v9 = vadd.f32 %v1416_v8, %v965_v6  ;;  %v844_v10 = vpop.f32.mrb[3].mxu1 }
 0x6b9   : > { %v966_v11 = vadd.f32 %v964_v7, %v844_v10 }
 0x6ba   : > { %969 = vst [vmem:[#allocation3 + $0x8] sm:$0xff] %v967_v9 }
 0x6bb   : > { %968 = vst [vmem:[#allocation3] sm:$0xff] %v966_v11 }
 0x6c1   : > { %v1082_v41 = vld [vmem:[#allocation3 + $0x8] sm:$0xff] }
 0x6c2   : > { %v1081_v42 = vld [vmem:[#allocation3] sm:$0xff]  ;;  %v1088_v45 = vmul.f32 %v1086_v43, %v1082_v41 }
 0x6c3   : > { %v1087_v46 = vmul.f32 %v1086_v43, %v1081_v42 }
 0x6c5   : > { %1459 = vmatprep.mubr.f32.mxu1 %v1087_v46 }
 0x6c6   : > { %1460 = vmatmul.mubr.f32.vlgmr.msra.gmra.mrb[0].mxu1 %v1088_v45 }
 0x799   : > { %v1461_v47 = vpop.f32.mrb[0].mxu1 }
 0x79a   : > { %1181 = vst [vmem:[%s1926_s13 + $0x8] sm:$0xff] %v1461_v47  ;;  %v1171_v48 = vpop.f32.mrb[1].mxu1 }
 0x79b   : > { %1180 = vst [vmem:[%s1926_s13] sm:$0xff] %v1171_v48 }
 0x79c PF: > { %s1338_s21 = sshll.u32 %s1720_s22, 7  ;;  %s1195_s17 = sshll.u32 %s1926_s13, 4  ;;  %s2011_s17 = int_to_ptr.vmem [resolvable:$true] %s1195_s17 }
 0x79d   : > { %s2008_s15 = scalar_lea.hbm %s2070_s5, %s1338_s21  ;;  %s1183_s27 = scalar_lea.sflag [#allocation8], %s1904_s26 }
 0x79e   : > { %s1634_s16 = scalar_lea.vmem %s2011_s17, 256  ;;  %p2085_p13 = scmp.ne.s32.totalorder %s2080_s8, 0 }
 0x79f   : > { %p1635_p12 = scmp.ne.s32.totalorder %s2011_s17, %s1634_s16  ;;  %s1745_s14 = smov [#allocation9]  }
 0x7a0   : > { %s1638_s6 = sshll.u32 %s1745_s14, 4  ;;  %s1639_s6 = int_to_ptr.vmem [resolvable:$false] %s1638_s6 }
 0x7a1   : > { %p1636_p2 = pnand %p1635_p12, %p2085_p13  ;;  %s1640_s22 = scalar_lea.vmem %s1639_s6, 512 }
 0x7a2   : > { %p1641_p3 = scmp.lt.s32.totalorder %s2011_s17, %s1639_s6  ;;  %p1642_p7 = scmp.lt.s32.totalorder %s1640_s22, %s1634_s16 }
 0x7a3   : > { %p1637_p5 = pneg %p1636_p2 }
 0x7a4   : > { %p1643_p8 = por %p1642_p7, %p1641_p3 }
 0x7a6   : > { %p1644_p1 = pnand %p1643_p8, %p1637_p5 }
 0x7a8   : > { %1647 = shalt.err (!%p1644_p1)
}
 0x7a9   : > { %s1648_s11 = scalar_lea.hbm %s2008_s15, 256  ;;  %s1652_s9 = scalar_lea.hbm %s2070_s5, 512 }
 0x7aa   : > { %p1649_p4 = scmp.ne.s32.totalorder %s2008_s15, %s1648_s11  ;;  %p1653_p11 = scmp.lt.u32.totalorder %s2008_s15, %s2070_s5 }
 0x7ab   : > { %p1654_p9 = scmp.lt.u32.totalorder %s1652_s9, %s1648_s11  ;;  %p1656_p12 = scmp.lt.u32.totalorder %s1648_s11, %s2008_s15 }
 0x7ac   : > { %p1650_p6 = pnand %p1649_p4, %p2085_p13 }
 0x7ad   : > { %p1655_p0 = por %p1654_p9, %p1653_p11 }
 0x7ae   : > { %p1651_p10 = pneg %p1650_p6 }
 0x7af   : > { %p1657_p2 = por %p1656_p12, %p1655_p0 }
 0x7b1   : > { %p1658_p5 = pnand %p1657_p2, %p1651_p10 }
 0x7b3   : > { %1661 = shalt.err (!%p1658_p5)
}
 0x7b4   : > { %s1746_s24 = smov 128   ;;  %s1747_s21 = smov 256  }
 0x7b5   : > { %s1748_s28 = smov 8  }
 0x7b6   : > { %1507 = dma.vmem_to_hbm [thread:$0]  (%p2085_p13), %s2011_s17, 256, %s2008_s15, %s1183_s27, %s1746_s24, %s1747_s21, %s1748_s28  }
 0x7b7 PF: > { %p1518_p3 = scmp.ge.s32.totalorder %s1732_s25, 2  ;;  %s1210_s29 = sand.u32 1, %s1704_s18  }
 0x7b8   : > { %p2086_p7 = scmp.ne.s32.totalorder %s2081_s10, 0  ;;  %s1211_s16 = scalar_lea.sflag [#allocation8], %s1210_s29 }
 0x7ba   : > { %p1514_p8 = pnand %p1518_p3, %p2086_p7 }
 0x7bc   : > { %1699 = dma.done.wait (!%p1514_p8), %s1211_s16, 256  }
 0x7bd   : > { %1701 = vsyncadd (!%p1514_p8), %s1211_s16, 4294967040  ;;  %s21_s25 = sadd.s32 1, %s1732_s25   ;;  %s2087_s22 = sld [smem:[#allocation12_spill]] }
 0x7be   : > { %p18_p1 = scmp.ge.s32.totalorder %s21_s25, 6   ;;  %s2088_s8 = sld [smem:[#allocation13_spill]] }
 0x7bf   : > { %s2089_s24 = sld [smem:[#allocation14_spill]]  ;;  %s2090_s18 = smov %s1708_s19 }
 0x7c0   : > { %s2091_s19 = smov %s1712_s20  ;;  %s2092_s20 = smov %s1855_s12 }
 0x7c1   : > { %s2093_s21 = smov %s1724_s23  ;;  %20 = sbr.rel (!%p18_p1) target bundleno = 9 (0x9), region = 99 }
 0x7c4   : > { %s2094_s23 = smov %s2088_s8 }
 0x7c8   :  { %1216 = vsyncpa [#allocation7], 1 }
 0x7c9   :  { %1218 = vsyncpa [#allocation7 + $0x1], 1 }
 0x7ca   :  { %1219 = vsyncpa [#allocation8], 1 }
 0x7cb   :  { %1221 = vsyncpa [#allocation8 + $0x1], 1 }

</bundles_post_ra>
